<compile_context>
chip_gen: v7x
topology: tpu7x:2x2x1
jax: 0.10.0
libtpu: 0.0.40
codegen_flags: <defaults>
</compile_context>

<pallas_src>
import math

import jax
import jax.numpy as jnp
from jax.experimental import pallas as pl
from jax.experimental.pallas import tpu as pltpu


def _build_pe_table(max_len: int, d_model: int) -> jnp.ndarray:
    """Deterministic sinusoidal table, identical to the PyTorch __init__ (f32)."""
    position = jnp.arange(max_len, dtype=jnp.float32)[:, None]          # (max_len, 1)
    div_term = jnp.exp(
        jnp.arange(0, d_model, 2, dtype=jnp.float32) * (-math.log(10000.0) / d_model)
    )                                                                    # (d_model/2,)
    pe = jnp.zeros((max_len, d_model), dtype=jnp.float32)
    pe = pe.at[:, 0::2].set(jnp.sin(position * div_term))
    pe = pe.at[:, 1::2].set(jnp.cos(position * div_term))
    return pe


def _make_gather_kernel(max_len: int):
    def kernel(pos_ref, pe_ref, out_ref):
        # pos_ref: (1, TB) f32 positions (lane-dense)            [VMEM]
        # pe_ref:  (L, d_model) full PE table                    [VMEM-resident]
        # out_ref: (TB, d_model) output tile                     [VMEM]
        table_len = pe_ref.shape[0]
        tb = out_ref.shape[0]

        # Fused index math (VPU is essentially idle in this DMA-bound kernel).
        # Cast to int BEFORE clamping so ragged-block padding garbage (possibly
        # NaN) still lands on a valid row; those rows are never written back.
        idx = jnp.round(pos_ref[...] * float(max_len)).astype(jnp.int32)  # (1, TB)
        idx = jnp.clip(idx, 0, table_len - 1)

        # Transposed one-hot via sublane-broadcast compare: no relayout of the
        # lane-dense index row needed. Exact 0/1 values in the table dtype.
        row_iota = jax.lax.broadcasted_iota(jnp.int32, (table_len, tb), 0)
        onehot_t = (row_iota == idx).astype(pe_ref.dtype)                 # (L, TB)

        # Row gather as A^T @ B on the MXU (contract dim 0 of both operands);
        # exact for one-hot selection with f32 accumulation.
        out_ref[...] = jax.lax.dot_general(
            onehot_t,
            pe_ref[...],
            dimension_numbers=(((0,), (0,)), ((), ())),
            preferred_element_type=jnp.float32,
        ).astype(out_ref.dtype)

    return kernel


def positional_encoding_trans(pos: jnp.ndarray, pe: jnp.ndarray, max_len: int,
                              *, block_rows: int | None = None) -> jnp.ndarray:
    """pos: any-shape float array; pe: (max_len, d_model). Returns pos.shape + (d_model,)."""
    table_len, d_model = pe.shape
    orig_shape = pos.shape
    pos_row = pos.reshape(-1).astype(jnp.float32)
    b = pos_row.shape[0]
    pos2d = pos_row.reshape(1, b)                       # lane-dense index source

    out_itemsize = jnp.dtype(pe.dtype).itemsize

    # Batch tile: target ~1 MiB output blocks (amortizes per-grid-step pipeline
    # overhead to near the HBM roofline), bounded by B.
    if block_rows is None:
        block_rows = min(4096, max(1024, (1 << 20) // max(1, d_model * out_itemsize)))
    tb = int(block_rows)
    if tb >= b:
        tb = b                                          # single full (unragged) block
    else:
        tb = max(128, (tb // 128) * 128)                # lane-dense pos blocks: TB % 128 == 0
    n_tiles = pl.cdiv(b, tb)                            # ragged last block handled by Pallas

    # VMEM budget (corrected): lane-dense pos blocks pad to 8 sublanes; table
    # counted double-buffered as a conservative bound in case Buffered(1) is
    # unavailable on this jax build.
    table_bytes = table_len * d_model * out_itemsize
    pos_block_bytes = 8 * tb * 4
    out_block_bytes = tb * d_model * out_itemsize
    needed = (2 * table_bytes
              + 2 * pos_block_bytes
              + 2 * out_block_bytes
              + (2 << 20))                              # compiler-internal scratch headroom

    # "parallel" lets v7x shard the batch axis across its two TensorCores
    # (no-op on single-TC v5e/v6e).
    cp_kwargs = dict(dimension_semantics=("parallel",))
    if needed > (16 << 20):                             # v5e's default scoped-VMEM limit
        try:
            vmem_cap = int(pltpu.get_tpu_info().vmem_capacity_bytes)
        except Exception:
            vmem_cap = 64 << 20                         # v7x: smallest physical VMEM
        # TODO(synk): if `needed` exceeds the physical cap (huge max_len*d_model),
        # switch to an HBM-resident table + scalar-prefetched DMA row gather
        # instead of the VMEM-resident one-hot matmul.
        cp_kwargs["vmem_limit_bytes"] = int(min(needed, vmem_cap - (8 << 20)))
    compiler_params = pltpu.CompilerParams(**cp_kwargs)

    def run(table_spec):
        return pl.pallas_call(
            _make_gather_kernel(max_len),
            out_shape=jax.ShapeDtypeStruct((b, d_model), pe.dtype),
            grid_spec=pltpu.PrefetchScalarGridSpec(
                num_scalar_prefetch=0,
                grid=(n_tiles,),
                in_specs=[
                    # lane-dense pos tile (TB values per step)
                    pl.BlockSpec((1, tb), lambda i: (0, i)),
                    # whole PE table, same block every step -> loaded into VMEM once
                    table_spec,
                ],
                out_specs=pl.BlockSpec((tb, d_model), lambda i: (i, 0)),
            ),
            compiler_params=compiler_params,
        )(pos2d, pe)

    try:
        # Constant-index table block: single buffer. The table is DMA'd exactly
        # once either way; double-buffering it only wastes resident VMEM (v7x).
        out = run(pl.BlockSpec((table_len, d_model), lambda i: (0, 0),
                               pipeline_mode=pl.Buffered(1)))
    except Exception:
        # Fallback for jax builds without BlockSpec pipeline_mode / Buffered(1).
        out = run(pl.BlockSpec((table_len, d_model), lambda i: (0, 0)))

    return out.reshape(*orig_shape, d_model)


if __name__ == "__main__":
    # Small, deterministic setup consistent with the module.
    max_len = 16
    d_model = 128          # lane-aligned last dim

    pe_f32 = _build_pe_table(max_len, d_model)      # exact PyTorch table (f32)
    pe = pe_f32.astype(jnp.bfloat16)                # bf16 serving copy (halves HBM traffic)

    key = jax.random.PRNGKey(0)
    # Arbitrary-shaped pos (flattened by the wrapper); values kept below
    # (max_len - 0.5)/max_len so round(pos*max_len) is in-bounds and the safety
    # clamp is a no-op (matches the original PyTorch indexing exactly).
    pos = jax.random.uniform(key, (2, 150), dtype=jnp.float32, minval=0.0, maxval=0.95)

    # Small tile to exercise the multi-step grid and the ragged last block
    # (300 rows = 2 full 128-row tiles + one 44-row partial tile).
    out_tiled = positional_encoding_trans(pos, pe, max_len, block_rows=128)
    # Default auto tiling (single full block at this size).
    out_auto = positional_encoding_trans(pos, pe, max_len)
    jax.block_until_ready((out_tiled, out_auto))

    # References.
    ref_idx = jnp.clip(jnp.round(pos * max_len).astype(jnp.int32), 0, max_len - 1)
    ref_bf16 = pe[ref_idx]          # exact reference gather from the served (bf16) table
    ref_f32 = pe_f32[ref_idx]       # PyTorch-fidelity reference (f32 table)

    assert out_tiled.shape == (2, 150, d_model) and out_auto.shape == (2, 150, d_model)
    assert out_tiled.dtype == pe.dtype and out_auto.dtype == pe.dtype
    # The gather machinery must be bit-exact w.r.t. the table it serves.
    assert bool(jnp.array_equal(out_tiled, ref_bf16)), "tiled path mismatch vs exact bf16 gather"
    assert bool(jnp.array_equal(out_auto, ref_bf16)), "auto path mismatch vs exact bf16 gather"
    # Fidelity to the original f32 module is bounded by bf16 rounding of sin/cos
    # values in [-1, 1]: |bf16(x) - x| <= 2^-9 * |x| < 4e-3.
    assert bool(jnp.allclose(out_auto.astype(jnp.float32), ref_f32, atol=4e-3, rtol=0.0)), \
        "mismatch vs f32 PyTorch reference beyond bf16 rounding bound"

    print("KERNEL_OK")
</pallas_src>

<mosaic_0001>
module attributes {stable_mosaic.version = 11 : i64} {
  func.func @kernel(%arg0: i32, %arg1: memref<1x128xf32, #tpu.memory_space<vmem>>, %arg2: memref<16x128xbf16, #tpu.memory_space<vmem>>, %arg3: memref<128x128xbf16, #tpu.memory_space<vmem>>) attributes {dimension_semantics = [#tpu.dimension_semantics<parallel>], iteration_bounds = array<i64: 3>, scalar_prefetch = 0 : i64, scratch_operands = 0 : i64, tpu.core_type = #tpu.core_type<tc>, window_params = [{transform_indices = @transform_0, window_bounds = array<i64: 1, 128>}, {pipeline_mode = #tpu.pipeline_mode<synchronous>, transform_indices = @transform_1, window_bounds = array<i64: 16, 128>}, {transform_indices = @transform_2, window_bounds = array<i64: 128, 128>}]} {
    %c0 = arith.constant 0 : index
    %c0_0 = arith.constant 0 : index
    %0 = vector.load %arg1[%c0, %c0_0] : memref<1x128xf32, #tpu.memory_space<vmem>>, vector<1x128xf32>
    %cst = arith.constant 1.600000e+01 : f32
    %1 = vector.broadcast %cst : f32 to vector<1x128xf32>
    %2 = arith.mulf %0, %1 : vector<1x128xf32>
    %3 = math.roundeven %2 : vector<1x128xf32>
    %4 = arith.fptosi %3 : vector<1x128xf32> to vector<1x128xi32>
    %c0_i32 = arith.constant 0 : i32
    %c15_i32 = arith.constant 15 : i32
    %5 = vector.broadcast %c0_i32 : i32 to vector<1x128xi32>
    %6 = arith.maxsi %5, %4 : vector<1x128xi32>
    %7 = vector.broadcast %c15_i32 : i32 to vector<1x128xi32>
    %8 = arith.minsi %7, %6 : vector<1x128xi32>
    %9 = tpu.iota {dimensions = array<i32: 0>} : vector<16x128xi32>
    %10 = vector.broadcast %8 : vector<1x128xi32> to vector<16x128xi32>
    %11 = arith.cmpi eq, %9, %10 : vector<16x128xi32>
    %12 = arith.extui %11 : vector<16x128xi1> to vector<16x128xi32>
    %13 = arith.sitofp %12 : vector<16x128xi32> to vector<16x128xf32>
    %14 = arith.truncf %13 : vector<16x128xf32> to vector<16x128xbf16>
    %c0_1 = arith.constant 0 : index
    %c0_2 = arith.constant 0 : index
    %15 = vector.load %arg2[%c0_1, %c0_2] : memref<16x128xbf16, #tpu.memory_space<vmem>>, vector<16x128xbf16>
    %cst_3 = arith.constant dense<0.000000e+00> : vector<128x128xf32>
    %16 = tpu.matmul %14, %15, %cst_3 {dimension_numbers = #tpu.dot_dimension_numbers<[0], [0], [1], [1], [0, 1, 1, 1], [], []>} : vector<16x128xbf16>, vector<16x128xbf16>, vector<128x128xf32> -> vector<128x128xf32>
    %17 = arith.truncf %16 : vector<128x128xf32> to vector<128x128xbf16>
    %c0_4 = arith.constant 0 : index
    %c0_5 = arith.constant 0 : index
    %18 = vector.load %arg3[%c0_4, %c0_5] : memref<128x128xbf16, #tpu.memory_space<vmem>>, vector<128x128xbf16>
    tpu.vector_store %arg3[%c0_4, %c0_5], %17 {strides = array<i32>} : memref<128x128xbf16, #tpu.memory_space<vmem>>, vector<128x128xbf16>,
    return
  }
  func.func @transform_0(%arg0: i32) -> (i32, i32) {
    %c0_i32 = arith.constant 0 : i32
    %c0_i32_0 = arith.constant 0 : i32
    return %c0_i32, %arg0 : i32, i32
  }
  func.func @transform_1(%arg0: i32) -> (i32, i32) {
    %c0_i32 = arith.constant 0 : i32
    %c0_i32_0 = arith.constant 0 : i32
    %c0_i32_1 = arith.constant 0 : i32
    return %c0_i32, %c0_i32_0 : i32, i32
  }
  func.func @transform_2(%arg0: i32) -> (i32, i32) {
    %c0_i32 = arith.constant 0 : i32
    %c0_i32_0 = arith.constant 0 : i32
    return %arg0, %c0_i32 : i32, i32
  }
}

module attributes {stable_mosaic.version = 11 : i64} {
  func.func @kernel(%arg0: i32, %arg1: memref<1x128xf32, #tpu.memory_space<vmem>>, %arg2: memref<16x128xbf16, #tpu.memory_space<vmem>>, %arg3: memref<128x128xbf16, #tpu.memory_space<vmem>>) attributes {dimension_semantics = [#tpu.dimension_semantics<parallel>], iteration_bounds = array<i64: 3>, scalar_prefetch = 0 : i64, scratch_operands = 0 : i64, tpu.core_type = #tpu.core_type<tc>, window_params = [{transform_indices = @transform_0, window_bounds = array<i64: 1, 128>}, {pipeline_mode = #tpu.pipeline_mode<synchronous>, transform_indices = @transform_1, window_bounds = array<i64: 16, 128>}, {transform_indices = @transform_2, window_bounds = array<i64: 128, 128>}]} {
    %c0 = arith.constant 0 : index
    %c0_0 = arith.constant 0 : index
    %0 = vector.load %arg1[%c0, %c0_0] : memref<1x128xf32, #tpu.memory_space<vmem>>, vector<1x128xf32>
    %cst = arith.constant 1.600000e+01 : f32
    %1 = vector.broadcast %cst : f32 to vector<1x128xf32>
    %2 = arith.mulf %0, %1 : vector<1x128xf32>
    %3 = math.roundeven %2 : vector<1x128xf32>
    %4 = arith.fptosi %3 : vector<1x128xf32> to vector<1x128xi32>
    %c0_i32 = arith.constant 0 : i32
    %c15_i32 = arith.constant 15 : i32
    %5 = vector.broadcast %c0_i32 : i32 to vector<1x128xi32>
    %6 = arith.maxsi %5, %4 : vector<1x128xi32>
    %7 = vector.broadcast %c15_i32 : i32 to vector<1x128xi32>
    %8 = arith.minsi %7, %6 : vector<1x128xi32>
    %9 = tpu.iota {dimensions = array<i32: 0>} : vector<16x128xi32>
    %10 = vector.broadcast %8 : vector<1x128xi32> to vector<16x128xi32>
    %11 = arith.cmpi eq, %9, %10 : vector<16x128xi32>
    %12 = arith.extui %11 : vector<16x128xi1> to vector<16x128xi32>
    %13 = arith.sitofp %12 : vector<16x128xi32> to vector<16x128xf32>
    %14 = arith.truncf %13 : vector<16x128xf32> to vector<16x128xbf16>
    %c0_1 = arith.constant 0 : index
    %c0_2 = arith.constant 0 : index
    %15 = vector.load %arg2[%c0_1, %c0_2] : memref<16x128xbf16, #tpu.memory_space<vmem>>, vector<16x128xbf16>
    %cst_3 = arith.constant dense<0.000000e+00> : vector<128x128xf32>
    %16 = tpu.matmul %14, %15, %cst_3 {dimension_numbers = #tpu.dot_dimension_numbers<[0], [0], [1], [1], [0, 1, 1, 1], [], []>} : vector<16x128xbf16>, vector<16x128xbf16>, vector<128x128xf32> -> vector<128x128xf32>
    %17 = arith.truncf %16 : vector<128x128xf32> to vector<128x128xbf16>
    %c0_4 = arith.constant 0 : index
    %c0_5 = arith.constant 0 : index
    %18 = vector.load %arg3[%c0_4, %c0_5] : memref<128x128xbf16, #tpu.memory_space<vmem>>, vector<128x128xbf16>
    tpu.vector_store %arg3[%c0_4, %c0_5], %17 {strides = array<i32>} : memref<128x128xbf16, #tpu.memory_space<vmem>>, vector<128x128xbf16>,
    return
  }
  func.func @transform_0(%arg0: i32) -> (i32, i32) {
    %c0_i32 = arith.constant 0 : i32
    %c0_i32_0 = arith.constant 0 : i32
    return %c0_i32, %arg0 : i32, i32
  }
  func.func @transform_1(%arg0: i32) -> (i32, i32) {
    %c0_i32 = arith.constant 0 : i32
    %c0_i32_0 = arith.constant 0 : i32
    %c0_i32_1 = arith.constant 0 : i32
    return %c0_i32, %c0_i32_0 : i32, i32
  }
  func.func @transform_2(%arg0: i32) -> (i32, i32) {
    %c0_i32 = arith.constant 0 : i32
    %c0_i32_0 = arith.constant 0 : i32
    return %arg0, %c0_i32 : i32, i32
  }
}

</mosaic_0001>

<bundles_post_ra>
// kernel: tpu_custom_call.1
= control target key start
LH: loop header
LB: loop body
LE: loop exit
PB: predicated region body
PF: predicated region fallthrough
CT: control target
= control target key end

     0   :  { %7 = vsyncpa [#allocation3], 0  ;;  %s1101_s0 = inlined_call_operand.hbm [shape: f32[1,300], index: 0, kind: input, shape index: {}]   ;;  %s1102_s1 = inlined_call_operand.hbm [shape: bf16[16,128], index: 1, kind: input, shape index: {}]   ;;  %s1103_s2 = inlined_call_operand.hbm [shape: bf16[300,128], index: 2, kind: output, shape index: {}]  }
   0x1   :  { %9 = vsyncpa [#allocation3 + $0x1], 0 }
   0x2   :  { %10 = vsyncpa [#allocation6], 0 }
   0x3   :  { %11 = vsyncpa [#allocation4], 0 }
   0x4   :  { %13 = vsyncpa [#allocation4 + $0x1], 0  ;;  %s880_s9 = smov 0   ;;  %s882_s10 = smov 0  }
   0x5   :  { %s884_s11 = smov 0   ;;  %s886_s12 = smov 0  }
   0x6 LB: > { %s901_s13 = sadd.s32 4294967295, %s855_s12   ;;  %s524_s14 = sadd.s32 4294967294, %s855_s12   ;;  %s855_s12 = sphi %s886_s12, %s1122_s12   ;;  %s851_s11 = sphi %s884_s11, %s1121_s11   ;;  %s847_s10 = sphi %s882_s10, %s1120_s10   ;;  %s843_s9 = sphi %s880_s9, %s1119_s9  }
   0x7   : > { %p39_p0 = scmp.ne.s32.totalorder %s847_s10, %s843_s9  ;;  %p1104_p1 = scmp.eq.s32.totalorder %s901_s13, 0 }
   0x8   : > { %p90_p3 = scmp.eq.s32.totalorder %s524_s14, 2  ;;  %p525_p5 = scmp.ge.s32.totalorder %s855_s12, 1 }
   0x9   : > { %p910_p4 = por %p1104_p1, %p39_p0  ;;  %p97_p7 = scmp.lt.s32.totalorder %s855_s12, 4 }
   0xa   : > { %p915_p6 = por %p90_p3, %p39_p0  ;;  %s857_s18 = smov [#allocation5]  }
   0xb   : > { %s1107_s15 = scalar_select %p910_p4, 1, 0 }
   0xc   : > { %s1108_s16 = scalar_select %p915_p6, 1, 0 }
   0xd   : > { %p920_p8 = pnand %p525_p5, %p97_p7  ;;  %s109_s19 = sshll.u32 %s857_s18, 4  ;;  %s110_s19 = int_to_ptr.vmem [resolvable:$true] %s109_s19 }
   0xe   : > { %s933_s21 = sadd.s32 1, %s855_s12   ;;  %s26_s22 = sadd.s32 1, %s851_s11 }
   0xf   : > { %s1109_s17 = scalar_select %p920_p8, 1, 0 }
  0x10   : > { %p671_p9 = pneg %p920_p8  ;;  %s23_s23 = ssub.s32 %s855_s12, %s933_s21 }
  0x11   : > { %s727_s26 = scalar_lea.hbm %s1102_s1, 128 }
  0x12   : > { %p928_p10 = pnand %p671_p9, %p1104_p1  ;;  %p728_p11 = scmp.ne.s32.totalorder %s1102_s1, %s727_s26 }
  0x13   : > { %p734_p3 = scmp.lt.u32.totalorder %s727_s26, %s1102_s1 }
  0x14   : > { %p729_p12 = pneg %p928_p10 }
  0x16   : > { %p730_p13 = pnand %p729_p12, %p728_p11 }
  0x18   : > { %p731_p0 = pneg %p730_p13 }
  0x1a   : > { %p736_p5 = pnand %p734_p3, %p731_p0 }
  0x1c   : > { %739 = shalt.err (!%p736_p5)
}
  0x1d   : > { %s740_s3 = scalar_lea.vmem %s110_s19, 128  ;;  %p748_p2 = scmp.lt.s32.totalorder %s110_s19, %s110_s19 }
  0x1e   : > { %p741_p7 = scmp.ne.s32.totalorder %s110_s19, %s740_s3  ;;  %p749_p6 = scmp.lt.s32.totalorder %s740_s3, %s740_s3 }
  0x20   : > { %p743_p9 = pnand %p741_p7, %p729_p12  ;;  %p750_p4 = por %p749_p6, %p748_p2 }
  0x22   : > { %p744_p1 = pneg %p743_p9 }
  0x24   : > { %p751_p8 = pnand %p750_p4, %p744_p1 }
  0x26   : > { %754 = shalt.err (!%p751_p8)
}
  0x27   : > { %s858_s4 = smov 64   ;;  %s859_s5 = smov 4  }
  0x28   : > { %674 = dma.hbm_to_vmem [thread:$0]  (!%p928_p10), %s1102_s1, 128, %s110_s19, [#allocation6], %s858_s4, %s858_s4, %s859_s5  }
  0x29   : > { %p24_p11 = scmp.eq.s32.totalorder %s23_s23, 0  ;;  %p33_p2 = scmp.ne.s32.totalorder %s851_s11, %s847_s10 }
  0x2a   : > { %p34_p1 = scmp.eq.s32.totalorder %s855_s12, 0  ;;  %p684_p4 = scmp.lt.s32.totalorder %s855_s12, 3 }
  0x2b   : > { %s959_s8 = scalar_select %p24_p11, %s851_s11, %s26_s22  }
  0x2c   : > { %p35_p6 = por %p34_p1, %p33_p2  ;;  %p1111_p8 = scmp.eq.s32.totalorder %s901_s13, 2 }
  0x2d   : > { %s123_s18 = sand.u32 1, %s851_s11   ;;  %s528_s24 = sshll.u32 %s855_s12, 4 }
  0x2e   : > { %p963_p12 = por %p1111_p8, %p33_p2  ;;  %s972_s26 = scalar_lea.hbm %s1101_s0, %s528_s24 }
  0x2f   : > { %s126_s19 = scalar_lea.vmem [#allocation2], %s123_s18  ;;  %p976_p10 = pnand %p684_p4, %p35_p6 }
  0x30   : > { %s133_s22 = sshll.u32 %s126_s19, 4  ;;  %s124_s27 = scalar_lea.sflag [#allocation3], %s123_s18  ;;  %s974_s22 = int_to_ptr.vmem [resolvable:$true] %s133_s22 }
  0x31   : > { %s755_s28 = scalar_lea.hbm %s972_s26, 16  ;;  %p757_p0 = pneg %p976_p10 }
  0x32   : > { %p756_p13 = scmp.ne.s32.totalorder %s972_s26, %s755_s28  ;;  %s760_s3 = scalar_lea.hbm %s1101_s0, 48 }
  0x33   : > { %p761_p7 = scmp.lt.u32.totalorder %s972_s26, %s1101_s0  ;;  %p762_p9 = scmp.lt.u32.totalorder %s760_s3, %s755_s28 }
  0x34   : > { %p758_p3 = pnand %p757_p0, %p756_p13  ;;  %p764_p2 = scmp.lt.u32.totalorder %s755_s28, %s972_s26 }
  0x35   : > { %p763_p11 = por %p762_p9, %p761_p7 }
  0x36   : > { %p759_p5 = pneg %p758_p3 }
  0x37   : > { %p765_p1 = por %p764_p2, %p763_p11 }
  0x39   : > { %p766_p4 = pnand %p765_p1, %p759_p5 }
  0x3b   : > { %769 = shalt.err (!%p766_p4)
}
  0x3c   : > { %s770_s6 = scalar_lea.vmem %s974_s22, 16  ;;  %s860_s7 = smov [#allocation2]  }
  0x3d   : > { %p771_p6 = scmp.ne.s32.totalorder %s974_s22, %s770_s6  ;;  %s775_s18 = sshll.u32 %s860_s7, 4  ;;  %s776_s18 = int_to_ptr.vmem [resolvable:$false] %s775_s18 }
  0x3e   : > { %s777_s24 = scalar_lea.vmem %s776_s18, 32  ;;  %p778_p3 = scmp.lt.s32.totalorder %s974_s22, %s776_s18 }
  0x3f   : > { %p773_p8 = pnand %p771_p6, %p757_p0  ;;  %p779_p7 = scmp.lt.s32.totalorder %s777_s24, %s770_s6 }
  0x41   : > { %p774_p13 = pneg %p773_p8  ;;  %p780_p9 = por %p779_p7, %p778_p3 }
  0x43   : > { %p781_p11 = pnand %p780_p9, %p774_p13 }
  0x45   : > { %784 = shalt.err (!%p781_p11)
}
  0x46   : > { %678 = dma.hbm_to_vmem [thread:$0]  (!%p976_p10), %s972_s26, 16, %s974_s22, %s124_s27  }
  0x47   : > { %p1114_p5 = scmp.ne.s32.totalorder %s1109_s17, 0 }
  0x48   : > { %s1008_s25 = sand.u32 (!%p1114_p5), 1, %s847_s10   ;;  %p1115_p0 = scmp.ne.s32.totalorder (!%p1114_p5), %s1107_s15, 0 }
  0x49   : > { %142 = sbr.rel (%p1114_p5) target bundleno = 476 (0x1dc), region = 28  ;;  %s145_s20 = scalar_lea.sflag (!%p1114_p5), [#allocation3], %s1008_s25 }
  0x4a   : > { %s147_s19 = scalar_lea.vmem (!%p1114_p5), [#allocation2], %s1008_s25 }
  0x50   : > { %830 = dma.done.wait (%p1115_p0), %s145_s20, 16  }
  0x51   : > { %832 = vsyncadd (%p1115_p0), %s145_s20, 4294967280  ;;  %p1116_p2 = scmp.eq.s32.totalorder %s901_s13, 0 }
  0x53   : > { %834 = dma.done.wait (%p1116_p2), [#allocation6], 128   ;;  %p1117_p10 = pmov %p1116_p2 }
  0x54   : > { %v184_v0 = vlaneseq  ;;  %v177_v1 = vld [vmem:[%s147_s19] sm:$0x1]  ;;  %v726_v4 = vld [vmem:[#allocation5] sm:$0xff]   ;;  %v861_v11 = vmov 0.0   ;;  %vm222_vm4 = vcmask 130048   ;;  %s531_s15 = sshll.u32 %s1008_s25, 6 }
  0x55   : > { %836 = vsyncadd (%p1117_p10), [#allocation6], 4294967168  ;;  %v178_v2 = vmul.f32 16.0, %v177_v1  ;;  %641 = vmatprep.subr.bf16.mxu0 %v726_v4  ;;  %659 = vmatprep.subr.bf16.mxu1 %v726_v4  ;;  %s1029_s17 = scalar_lea.vmem [#allocation7], %s531_s15  ;;  %s425_s26 = scalar_lea.sflag [#allocation4], %s1008_s25 }
  0x56   : > { %v185_v3 = vshrl.u32 %v184_v0, 7  ;;  %642 = vmatpush3.bf16.msra.mxu0 %v726_v4  ;;  %660 = vmatpush3.bf16.msra.mxu1 %v726_v4  ;;  %s560_s22 = sshll.u32 (%p963_p12), %s901_s13, 4 }
  0x57   : > { %v663_v5 = vcvt.f32.s32 %v178_v2  ;;  %s433_s23 = ssub.s32 (%p963_p12), 38, %s560_s22 }
  0x58   : > { %v189_v6 = vsub.s32 0, %v185_v3  ;;  %v186_v8 = vadd.s32 8, %v185_v3  ;;  %p434_p1 = scmp.lt.s32.totalorder (%p963_p12), %s433_s23, 16 }
  0x59   : > { %vm180_vm0 = vcmp.gt.s32.totalorder %v663_v5, 0 }
  0x5a   : > { %v181_v7 = vsel %vm180_vm0, %v663_v5, 0 }
  0x5b   : > { %vm182_vm1 = vcmp.lt.s32.totalorder %v181_v7, 15 }
  0x5c   : > { %v183_v9 = vsel %vm182_vm1, %v181_v7, 15 }
  0x5d   : > { %v190_v10 = vrot.slane %v183_v9, %v189_v6 }
  0x5f   : > { %vm191_vm2 = vcmp.eq.s32.totalorder %v185_v3, %v190_v10  ;;  %vm192_vm3 = vcmp.eq.s32.totalorder %v186_v8, %v190_v10 }
  0x60   : > { %v532_v12 = vsel %vm191_vm2, 1.0, %v861_v11  ;;  %v533_v13 = vsel %vm192_vm3, 1.0, %v861_v11 }
  0x61   : > { %v197_v14 = vpack.c.bf16 %v533_v13, %v532_v12 }
  0x63   : > { %200 = vxpose.xlu0.c.b16.start.end [1/1] (short) %v197_v14, 128 }
  0xc9   : > { %v208_v15 = vpop.trf.xlu0 }
  0xca   : > { %643 = vmatprep.mubr.msk.bf16.mxu0 %vm222_vm4, %v208_v15 }
  0xcd   : > { %v209_v16 = vpop.trf.xlu0 }
  0xce   : > { %644 = vmatmul.mubr.msk.bf16.vlgmr.msra.gmra.mrb[0].mxu0 %vm222_vm4, %v209_v16 }
  0xd1   : > { %v210_v17 = vpop.trf.xlu0 }
  0xd2   : > { %647 = vmatprep.mubr.msk.bf16.mxu0 %vm222_vm4, %v210_v17 }
  0xd5   : > { %v211_v18 = vpop.trf.xlu0 }
  0xd6   : > { %648 = vmatmul.mubr.msk.bf16.gmra.mrb[4].mxu0 %vm222_vm4, %v211_v18 }
  0xd9   : > { %v212_v19 = vpop.trf.xlu0 }
  0xda   : > { %651 = vmatprep.mubr.msk.bf16.mxu1 %vm222_vm4, %v212_v19 }
  0xdd   : > { %v213_v20 = vpop.trf.xlu0 }
  0xde   : > { %652 = vmatmul.mubr.msk.bf16.vlgmr.msra.gmra.mrb[0].mxu1 %vm222_vm4, %v213_v20 }
  0xe1   : > { %v214_v21 = vpop.trf.xlu0 }
  0xe2   : > { %655 = vmatprep.mubr.msk.bf16.mxu1 %vm222_vm4, %v214_v21 }
  0xe5   : > { %v215_v22 = vpop.trf.xlu0 }
  0xe6   : > { %656 = vmatmul.mubr.msk.bf16.gmra.mrb[4].mxu1 %vm222_vm4, %v215_v22 }
 0x1a1   : > { %v645_v23 = vpop.f32.mrb[0].mxu0 }
 0x1a2   : > { %v281_v24 = vpop.f32.mrb[1].mxu0 }
 0x1a3   : > { %v646_v25 = vpop.f32.mrb[2].mxu0 }
 0x1a4   : > { %v593_v26 = vpack.c.bf16 %v646_v25, %v645_v23  ;;  %v284_v27 = vpop.f32.mrb[3].mxu0 }
 0x1a5   : > { %v588_v28 = vpack.c.bf16 %v284_v27, %v281_v24 }
 0x1a6   : > { %625 = vst [vmem:[%s1029_s17 + $0x8] sm:$0xff] %v593_v26  }
 0x1a7   : > { %589 = vst [vmem:[%s1029_s17] sm:$0xff] %v588_v28  }
 0x1a9   : > { %v649_v29 = vpop.f32.mrb[4].mxu0 }
 0x1aa   : > { %v297_v30 = vpop.f32.mrb[5].mxu0 }
 0x1ab   : > { %v650_v31 = vpop.f32.mrb[6].mxu0 }
 0x1ac   : > { %v603_v32 = vpack.c.bf16 %v650_v31, %v649_v29  ;;  %v300_v33 = vpop.f32.mrb[7].mxu0 }
 0x1ad   : > { %v598_v34 = vpack.c.bf16 %v300_v33, %v297_v30 }
 0x1ae   : > { %627 = vst [vmem:[%s1029_s17 + $0x18] sm:$0xff] %v603_v32  }
 0x1af   : > { %626 = vst [vmem:[%s1029_s17 + $0x10] sm:$0xff] %v598_v34  }
 0x1b1   : > { %v653_v35 = vpop.f32.mrb[0].mxu1 }
 0x1b2   : > { %v313_v36 = vpop.f32.mrb[1].mxu1 }
 0x1b3   : > { %v654_v37 = vpop.f32.mrb[2].mxu1 }
 0x1b4   : > { %v613_v38 = vpack.c.bf16 %v654_v37, %v653_v35  ;;  %v316_v39 = vpop.f32.mrb[3].mxu1 }
 0x1b5   : > { %v608_v40 = vpack.c.bf16 %v316_v39, %v313_v36 }
 0x1b6   : > { %629 = vst [vmem:[%s1029_s17 + $0x28] sm:$0xff] %v613_v38  }
 0x1b7   : > { %628 = vst [vmem:[%s1029_s17 + $0x20] sm:$0xff] %v608_v40  }
 0x1b9   : > { %v657_v41 = vpop.f32.mrb[4].mxu1  ;;  %431 = sbr.rel (!%p963_p12) target bundleno = 476 (0x1dc), region = 40 }
 0x1ba   : > { %v329_v42 = vpop.f32.mrb[5].mxu1 }
 0x1bb   : > { %v658_v43 = vpop.f32.mrb[6].mxu1 }
 0x1bc   : > { %v623_v44 = vpack.c.bf16 %v658_v43, %v657_v41  ;;  %v332_v45 = vpop.f32.mrb[7].mxu1 }
 0x1bd   : > { %v618_v46 = vpack.c.bf16 %v332_v45, %v329_v42 }
 0x1be   : > { %631 = vst [vmem:[%s1029_s17 + $0x38] sm:$0xff] %v623_v44  }
 0x1bf   : > { %630 = vst [vmem:[%s1029_s17 + $0x30] sm:$0xff] %v618_v46  }
 0x1c0   : > { %s1124_s23 = smov (!%p434_p1, %s433_s23), 16 }
 0x1c1   : > { %s1043_s27 = sshll.u32 %s1124_s23, 6 }
 0x1c2   : > { %s438_s28 = ssub.s32 1024, %s1043_s27 }
 0x1c3   : > { %439 = vsyncadd %s425_s26, %s438_s28  ;;  %p562_p4 = scmp.ne.s32.totalorder %s1043_s27, 0  ;;  %s584_s14 = sshll.u32 %s901_s13, 10 }
 0x1c4   : > { %s1053_s3 = scalar_lea.hbm %s1103_s2, %s584_s14  ;;  %s444_s4 = sshll.u32 %s1029_s17, 4  ;;  %s1056_s4 = int_to_ptr.vmem [resolvable:$true] %s444_s4 }
 0x1c5   : > { %s785_s5 = scalar_lea.vmem %s1056_s4, %s1043_s27  ;;  %s862_s6 = smov [#allocation7]  }
 0x1c6   : > { %p786_p12 = scmp.ne.s32.totalorder %s1056_s4, %s785_s5  ;;  %s789_s7 = sshll.u32 %s862_s6, 4  ;;  %s790_s7 = int_to_ptr.vmem [resolvable:$false] %s789_s7 }
 0x1c7   : > { %s791_s13 = scalar_lea.vmem %s790_s7, 2048  ;;  %p792_p13 = scmp.lt.s32.totalorder %s1056_s4, %s790_s7 }
 0x1c8   : > { %p787_p6 = pnand %p786_p12, %p562_p4  ;;  %p793_p3 = scmp.lt.s32.totalorder %s791_s13, %s785_s5 }
 0x1ca   : > { %p788_p8 = pneg %p787_p6  ;;  %p794_p7 = por %p793_p3, %p792_p13 }
 0x1cc   : > { %p795_p9 = pnand %p794_p7, %p788_p8 }
 0x1ce   : > { %798 = shalt.err (!%p795_p9)
}
 0x1cf   : > { %s799_s18 = scalar_lea.hbm %s1053_s3, %s1043_s27  ;;  %s803_s19 = scalar_lea.hbm %s1103_s2, 2432 }
 0x1d0   : > { %p800_p11 = scmp.ne.s32.totalorder %s1053_s3, %s799_s18  ;;  %p804_p2 = scmp.lt.u32.totalorder %s1053_s3, %s1103_s2 }
 0x1d1   : > { %p805_p10 = scmp.lt.u32.totalorder %s803_s19, %s799_s18  ;;  %p807_p12 = scmp.lt.u32.totalorder %s799_s18, %s1053_s3 }
 0x1d2   : > { %p801_p5 = pnand %p800_p11, %p562_p4 }
 0x1d3   : > { %p806_p1 = por %p805_p10, %p804_p2 }
 0x1d4   : > { %p802_p0 = pneg %p801_p5 }
 0x1d5   : > { %p808_p6 = por %p807_p12, %p806_p1 }
 0x1d7   : > { %p809_p8 = pnand %p808_p6, %p802_p0 }
 0x1d9   : > { %812 = shalt.err (!%p809_p8)
}
 0x1da   : > { %s863_s22 = smov 64   ;;  %s864_s23 = smov 4  }
 0x1db   : > { %450 = dma.vmem_to_hbm [thread:$0]  (%p562_p4), %s1056_s4, %s1043_s27, %s1053_s3, %s425_s26, %s863_s22, %s863_s22, %s864_s23  }
 0x1dc PF: > { %p686_p13 = scmp.ge.s32.totalorder %s855_s12, 2  ;;  %s459_s28 = sand.u32 1, %s843_s9  }
 0x1dd   : > { %p1118_p3 = scmp.ne.s32.totalorder %s1108_s16, 0  ;;  %s460_s14 = scalar_lea.sflag [#allocation4], %s459_s28 }
 0x1df   : > { %p680_p7 = pnand %p686_p13, %p1118_p3 }
 0x1e1   : > { %838 = dma.done.wait (!%p680_p7), %s460_s14, 1024  }
 0x1e2   : > { %840 = vsyncadd (!%p680_p7), %s460_s14, 4294966272  ;;  %p16_p9 = scmp.ge.s32.totalorder %s933_s21, 5   ;;  %s1119_s9 = smov %s847_s10 }
 0x1e3   : > { %s1120_s10 = smov %s851_s11  ;;  %s1121_s11 = smov %s959_s8 }
 0x1e4   : > { %s1122_s12 = smov %s933_s21  ;;  %18 = sbr.rel (!%p16_p9) target bundleno = 6 (0x6), region = 77 }
 0x1eb   :  { %465 = vsyncpa [#allocation3], 1 }
 0x1ec   :  { %467 = vsyncpa [#allocation3 + $0x1], 1 }
 0x1ed   :  { %468 = vsyncpa [#allocation6], 1 }
 0x1ee   :  { %469 = vsyncpa [#allocation4], 1 }
 0x1ef   :  { %471 = vsyncpa [#allocation4 + $0x1], 1 }

// kernel: tpu_custom_call.1
= control target key start
LH: loop header
LB: loop body
LE: loop exit
PB: predicated region body
PF: predicated region fallthrough
CT: control target
= control target key end

     0   :  { %7 = vsyncpa [#allocation3], 0  ;;  %s1101_s0 = inlined_call_operand.hbm [shape: f32[1,300], index: 0, kind: input, shape index: {}]   ;;  %s1102_s1 = inlined_call_operand.hbm [shape: bf16[16,128], index: 1, kind: input, shape index: {}]   ;;  %s1103_s2 = inlined_call_operand.hbm [shape: bf16[300,128], index: 2, kind: output, shape index: {}]  }
   0x1   :  { %9 = vsyncpa [#allocation3 + $0x1], 0 }
   0x2   :  { %10 = vsyncpa [#allocation6], 0 }
   0x3   :  { %11 = vsyncpa [#allocation4], 0 }
   0x4   :  { %13 = vsyncpa [#allocation4 + $0x1], 0  ;;  %s880_s9 = smov 0   ;;  %s882_s10 = smov 0  }
   0x5   :  { %s884_s11 = smov 0   ;;  %s886_s12 = smov 0  }
   0x6 LB: > { %s901_s13 = sadd.s32 4294967295, %s855_s12   ;;  %s524_s14 = sadd.s32 4294967294, %s855_s12   ;;  %s855_s12 = sphi %s886_s12, %s1122_s12   ;;  %s851_s11 = sphi %s884_s11, %s1121_s11   ;;  %s847_s10 = sphi %s882_s10, %s1120_s10   ;;  %s843_s9 = sphi %s880_s9, %s1119_s9  }
   0x7   : > { %p39_p0 = scmp.ne.s32.totalorder %s847_s10, %s843_s9  ;;  %p1104_p1 = scmp.eq.s32.totalorder %s901_s13, 0 }
   0x8   : > { %p90_p3 = scmp.eq.s32.totalorder %s524_s14, 2  ;;  %p525_p5 = scmp.ge.s32.totalorder %s855_s12, 1 }
   0x9   : > { %p910_p4 = por %p1104_p1, %p39_p0  ;;  %p97_p7 = scmp.lt.s32.totalorder %s855_s12, 4 }
   0xa   : > { %p915_p6 = por %p90_p3, %p39_p0  ;;  %s857_s18 = smov [#allocation5]  }
   0xb   : > { %s1107_s15 = scalar_select %p910_p4, 1, 0 }
   0xc   : > { %s1108_s16 = scalar_select %p915_p6, 1, 0 }
   0xd   : > { %p920_p8 = pnand %p525_p5, %p97_p7  ;;  %s109_s19 = sshll.u32 %s857_s18, 4  ;;  %s110_s19 = int_to_ptr.vmem [resolvable:$true] %s109_s19 }
   0xe   : > { %s933_s21 = sadd.s32 1, %s855_s12   ;;  %s26_s22 = sadd.s32 1, %s851_s11 }
   0xf   : > { %s1109_s17 = scalar_select %p920_p8, 1, 0 }
  0x10   : > { %p671_p9 = pneg %p920_p8  ;;  %s23_s23 = ssub.s32 %s855_s12, %s933_s21 }
  0x11   : > { %s727_s26 = scalar_lea.hbm %s1102_s1, 128 }
  0x12   : > { %p928_p10 = pnand %p671_p9, %p1104_p1  ;;  %p728_p11 = scmp.ne.s32.totalorder %s1102_s1, %s727_s26 }
  0x13   : > { %p734_p3 = scmp.lt.u32.totalorder %s727_s26, %s1102_s1 }
  0x14   : > { %p729_p12 = pneg %p928_p10 }
  0x16   : > { %p730_p13 = pnand %p729_p12, %p728_p11 }
  0x18   : > { %p731_p0 = pneg %p730_p13 }
  0x1a   : > { %p736_p5 = pnand %p734_p3, %p731_p0 }
  0x1c   : > { %739 = shalt.err (!%p736_p5)
}
  0x1d   : > { %s740_s3 = scalar_lea.vmem %s110_s19, 128  ;;  %p748_p2 = scmp.lt.s32.totalorder %s110_s19, %s110_s19 }
  0x1e   : > { %p741_p7 = scmp.ne.s32.totalorder %s110_s19, %s740_s3  ;;  %p749_p6 = scmp.lt.s32.totalorder %s740_s3, %s740_s3 }
  0x20   : > { %p743_p9 = pnand %p741_p7, %p729_p12  ;;  %p750_p4 = por %p749_p6, %p748_p2 }
  0x22   : > { %p744_p1 = pneg %p743_p9 }
  0x24   : > { %p751_p8 = pnand %p750_p4, %p744_p1 }
  0x26   : > { %754 = shalt.err (!%p751_p8)
}
  0x27   : > { %s858_s4 = smov 64   ;;  %s859_s5 = smov 4  }
  0x28   : > { %674 = dma.hbm_to_vmem [thread:$0]  (!%p928_p10), %s1102_s1, 128, %s110_s19, [#allocation6], %s858_s4, %s858_s4, %s859_s5  }
  0x29   : > { %p24_p11 = scmp.eq.s32.totalorder %s23_s23, 0  ;;  %p33_p2 = scmp.ne.s32.totalorder %s851_s11, %s847_s10 }
  0x2a   : > { %p34_p1 = scmp.eq.s32.totalorder %s855_s12, 0  ;;  %p684_p4 = scmp.lt.s32.totalorder %s855_s12, 3 }
  0x2b   : > { %s959_s8 = scalar_select %p24_p11, %s851_s11, %s26_s22  }
  0x2c   : > { %p35_p6 = por %p34_p1, %p33_p2  ;;  %p1111_p8 = scmp.eq.s32.totalorder %s901_s13, 2 }
  0x2d   : > { %s123_s18 = sand.u32 1, %s851_s11   ;;  %s528_s24 = sshll.u32 %s855_s12, 4 }
  0x2e   : > { %p963_p12 = por %p1111_p8, %p33_p2  ;;  %s972_s26 = scalar_lea.hbm %s1101_s0, %s528_s24 }
  0x2f   : > { %s126_s19 = scalar_lea.vmem [#allocation2], %s123_s18  ;;  %p976_p10 = pnand %p684_p4, %p35_p6 }
  0x30   : > { %s133_s22 = sshll.u32 %s126_s19, 4  ;;  %s124_s27 = scalar_lea.sflag [#allocation3], %s123_s18  ;;  %s974_s22 = int_to_ptr.vmem [resolvable:$true] %s133_s22 }
  0x31   : > { %s755_s28 = scalar_lea.hbm %s972_s26, 16  ;;  %p757_p0 = pneg %p976_p10 }
  0x32   : > { %p756_p13 = scmp.ne.s32.totalorder %s972_s26, %s755_s28  ;;  %s760_s3 = scalar_lea.hbm %s1101_s0, 48 }
  0x33   : > { %p761_p7 = scmp.lt.u32.totalorder %s972_s26, %s1101_s0  ;;  %p762_p9 = scmp.lt.u32.totalorder %s760_s3, %s755_s28 }
  0x34   : > { %p758_p3 = pnand %p757_p0, %p756_p13  ;;  %p764_p2 = scmp.lt.u32.totalorder %s755_s28, %s972_s26 }
  0x35   : > { %p763_p11 = por %p762_p9, %p761_p7 }
  0x36   : > { %p759_p5 = pneg %p758_p3 }
  0x37   : > { %p765_p1 = por %p764_p2, %p763_p11 }
  0x39   : > { %p766_p4 = pnand %p765_p1, %p759_p5 }
  0x3b   : > { %769 = shalt.err (!%p766_p4)
}
  0x3c   : > { %s770_s6 = scalar_lea.vmem %s974_s22, 16  ;;  %s860_s7 = smov [#allocation2]  }
  0x3d   : > { %p771_p6 = scmp.ne.s32.totalorder %s974_s22, %s770_s6  ;;  %s775_s18 = sshll.u32 %s860_s7, 4  ;;  %s776_s18 = int_to_ptr.vmem [resolvable:$false] %s775_s18 }
  0x3e   : > { %s777_s24 = scalar_lea.vmem %s776_s18, 32  ;;  %p778_p3 = scmp.lt.s32.totalorder %s974_s22, %s776_s18 }
  0x3f   : > { %p773_p8 = pnand %p771_p6, %p757_p0  ;;  %p779_p7 = scmp.lt.s32.totalorder %s777_s24, %s770_s6 }
  0x41   : > { %p774_p13 = pneg %p773_p8  ;;  %p780_p9 = por %p779_p7, %p778_p3 }
  0x43   : > { %p781_p11 = pnand %p780_p9, %p774_p13 }
  0x45   : > { %784 = shalt.err (!%p781_p11)
}
  0x46   : > { %678 = dma.hbm_to_vmem [thread:$0]  (!%p976_p10), %s972_s26, 16, %s974_s22, %s124_s27  }
  0x47   : > { %p1114_p5 = scmp.ne.s32.totalorder %s1109_s17, 0 }
  0x48   : > { %s1008_s25 = sand.u32 (!%p1114_p5), 1, %s847_s10   ;;  %p1115_p0 = scmp.ne.s32.totalorder (!%p1114_p5), %s1107_s15, 0 }
  0x49   : > { %142 = sbr.rel (%p1114_p5) target bundleno = 476 (0x1dc), region = 28  ;;  %s145_s20 = scalar_lea.sflag (!%p1114_p5), [#allocation3], %s1008_s25 }
  0x4a   : > { %s147_s19 = scalar_lea.vmem (!%p1114_p5), [#allocation2], %s1008_s25 }
  0x50   : > { %830 = dma.done.wait (%p1115_p0), %s145_s20, 16  }
  0x51   : > { %832 = vsyncadd (%p1115_p0), %s145_s20, 4294967280  ;;  %p1116_p2 = scmp.eq.s32.totalorder %s901_s13, 0 }
  0x53   : > { %834 = dma.done.wait (%p1116_p2), [#allocation6], 128   ;;  %p1117_p10 = pmov %p1116_p2 }
  0x54   : > { %v184_v0 = vlaneseq  ;;  %v177_v1 = vld [vmem:[%s147_s19] sm:$0x1]  ;;  %v726_v4 = vld [vmem:[#allocation5] sm:$0xff]   ;;  %v861_v11 = vmov 0.0   ;;  %vm222_vm4 = vcmask 130048   ;;  %s531_s15 = sshll.u32 %s1008_s25, 6 }
  0x55   : > { %836 = vsyncadd (%p1117_p10), [#allocation6], 4294967168  ;;  %v178_v2 = vmul.f32 16.0, %v177_v1  ;;  %641 = vmatprep.subr.bf16.mxu0 %v726_v4  ;;  %659 = vmatprep.subr.bf16.mxu1 %v726_v4  ;;  %s1029_s17 = scalar_lea.vmem [#allocation7], %s531_s15  ;;  %s425_s26 = scalar_lea.sflag [#allocation4], %s1008_s25 }
  0x56   : > { %v185_v3 = vshrl.u32 %v184_v0, 7  ;;  %642 = vmatpush3.bf16.msra.mxu0 %v726_v4  ;;  %660 = vmatpush3.bf16.msra.mxu1 %v726_v4  ;;  %s560_s22 = sshll.u32 (%p963_p12), %s901_s13, 4 }
  0x57   : > { %v663_v5 = vcvt.f32.s32 %v178_v2  ;;  %s433_s23 = ssub.s32 (%p963_p12), 38, %s560_s22 }
  0x58   : > { %v189_v6 = vsub.s32 0, %v185_v3  ;;  %v186_v8 = vadd.s32 8, %v185_v3  ;;  %p434_p1 = scmp.lt.s32.totalorder (%p963_p12), %s433_s23, 16 }
  0x59   : > { %vm180_vm0 = vcmp.gt.s32.totalorder %v663_v5, 0 }
  0x5a   : > { %v181_v7 = vsel %vm180_vm0, %v663_v5, 0 }
  0x5b   : > { %vm182_vm1 = vcmp.lt.s32.totalorder %v181_v7, 15 }
  0x5c   : > { %v183_v9 = vsel %vm182_vm1, %v181_v7, 15 }
  0x5d   : > { %v190_v10 = vrot.slane %v183_v9, %v189_v6 }
  0x5f   : > { %vm191_vm2 = vcmp.eq.s32.totalorder %v185_v3, %v190_v10  ;;  %vm192_vm3 = vcmp.eq.s32.totalorder %v186_v8, %v190_v10 }
  0x60   : > { %v532_v12 = vsel %vm191_vm2, 1.0, %v861_v11  ;;  %v533_v13 = vsel %vm192_vm3, 1.0, %v861_v11 }
  0x61   : > { %v197_v14 = vpack.c.bf16 %v533_v13, %v532_v12 }
  0x63   : > { %200 = vxpose.xlu0.c.b16.start.end [1/1] (short) %v197_v14, 128 }
  0xc9   : > { %v208_v15 = vpop.trf.xlu0 }
  0xca   : > { %643 = vmatprep.mubr.msk.bf16.mxu0 %vm222_vm4, %v208_v15 }
  0xcd   : > { %v209_v16 = vpop.trf.xlu0 }
  0xce   : > { %644 = vmatmul.mubr.msk.bf16.vlgmr.msra.gmra.mrb[0].mxu0 %vm222_vm4, %v209_v16 }
  0xd1   : > { %v210_v17 = vpop.trf.xlu0 }
  0xd2   : > { %647 = vmatprep.mubr.msk.bf16.mxu0 %vm222_vm4, %v210_v17 }
  0xd5   : > { %v211_v18 = vpop.trf.xlu0 }
  0xd6   : > { %648 = vmatmul.mubr.msk.bf16.gmra.mrb[4].mxu0 %vm222_vm4, %v211_v18 }
  0xd9   : > { %v212_v19 = vpop.trf.xlu0 }
  0xda   : > { %651 = vmatprep.mubr.msk.bf16.mxu1 %vm222_vm4, %v212_v19 }
  0xdd   : > { %v213_v20 = vpop.trf.xlu0 }
  0xde   : > { %652 = vmatmul.mubr.msk.bf16.vlgmr.msra.gmra.mrb[0].mxu1 %vm222_vm4, %v213_v20 }
  0xe1   : > { %v214_v21 = vpop.trf.xlu0 }
  0xe2   : > { %655 = vmatprep.mubr.msk.bf16.mxu1 %vm222_vm4, %v214_v21 }
  0xe5   : > { %v215_v22 = vpop.trf.xlu0 }
  0xe6   : > { %656 = vmatmul.mubr.msk.bf16.gmra.mrb[4].mxu1 %vm222_vm4, %v215_v22 }
 0x1a1   : > { %v645_v23 = vpop.f32.mrb[0].mxu0 }
 0x1a2   : > { %v281_v24 = vpop.f32.mrb[1].mxu0 }
 0x1a3   : > { %v646_v25 = vpop.f32.mrb[2].mxu0 }
 0x1a4   : > { %v593_v26 = vpack.c.bf16 %v646_v25, %v645_v23  ;;  %v284_v27 = vpop.f32.mrb[3].mxu0 }
 0x1a5   : > { %v588_v28 = vpack.c.bf16 %v284_v27, %v281_v24 }
 0x1a6   : > { %625 = vst [vmem:[%s1029_s17 + $0x8] sm:$0xff] %v593_v26  }
 0x1a7   : > { %589 = vst [vmem:[%s1029_s17] sm:$0xff] %v588_v28  }
 0x1a9   : > { %v649_v29 = vpop.f32.mrb[4].mxu0 }
 0x1aa   : > { %v297_v30 = vpop.f32.mrb[5].mxu0 }
 0x1ab   : > { %v650_v31 = vpop.f32.mrb[6].mxu0 }
 0x1ac   : > { %v603_v32 = vpack.c.bf16 %v650_v31, %v649_v29  ;;  %v300_v33 = vpop.f32.mrb[7].mxu0 }
 0x1ad   : > { %v598_v34 = vpack.c.bf16 %v300_v33, %v297_v30 }
 0x1ae   : > { %627 = vst [vmem:[%s1029_s17 + $0x18] sm:$0xff] %v603_v32  }
 0x1af   : > { %626 = vst [vmem:[%s1029_s17 + $0x10] sm:$0xff] %v598_v34  }
 0x1b1   : > { %v653_v35 = vpop.f32.mrb[0].mxu1 }
 0x1b2   : > { %v313_v36 = vpop.f32.mrb[1].mxu1 }
 0x1b3   : > { %v654_v37 = vpop.f32.mrb[2].mxu1 }
 0x1b4   : > { %v613_v38 = vpack.c.bf16 %v654_v37, %v653_v35  ;;  %v316_v39 = vpop.f32.mrb[3].mxu1 }
 0x1b5   : > { %v608_v40 = vpack.c.bf16 %v316_v39, %v313_v36 }
 0x1b6   : > { %629 = vst [vmem:[%s1029_s17 + $0x28] sm:$0xff] %v613_v38  }
 0x1b7   : > { %628 = vst [vmem:[%s1029_s17 + $0x20] sm:$0xff] %v608_v40  }
 0x1b9   : > { %v657_v41 = vpop.f32.mrb[4].mxu1  ;;  %431 = sbr.rel (!%p963_p12) target bundleno = 476 (0x1dc), region = 40 }
 0x1ba   : > { %v329_v42 = vpop.f32.mrb[5].mxu1 }
 0x1bb   : > { %v658_v43 = vpop.f32.mrb[6].mxu1 }
 0x1bc   : > { %v623_v44 = vpack.c.bf16 %v658_v43, %v657_v41  ;;  %v332_v45 = vpop.f32.mrb[7].mxu1 }
 0x1bd   : > { %v618_v46 = vpack.c.bf16 %v332_v45, %v329_v42 }
 0x1be   : > { %631 = vst [vmem:[%s1029_s17 + $0x38] sm:$0xff] %v623_v44  }
 0x1bf   : > { %630 = vst [vmem:[%s1029_s17 + $0x30] sm:$0xff] %v618_v46  }
 0x1c0   : > { %s1124_s23 = smov (!%p434_p1, %s433_s23), 16 }
 0x1c1   : > { %s1043_s27 = sshll.u32 %s1124_s23, 6 }
 0x1c2   : > { %s438_s28 = ssub.s32 1024, %s1043_s27 }
 0x1c3   : > { %439 = vsyncadd %s425_s26, %s438_s28  ;;  %p562_p4 = scmp.ne.s32.totalorder %s1043_s27, 0  ;;  %s584_s14 = sshll.u32 %s901_s13, 10 }
 0x1c4   : > { %s1053_s3 = scalar_lea.hbm %s1103_s2, %s584_s14  ;;  %s444_s4 = sshll.u32 %s1029_s17, 4  ;;  %s1056_s4 = int_to_ptr.vmem [resolvable:$true] %s444_s4 }
 0x1c5   : > { %s785_s5 = scalar_lea.vmem %s1056_s4, %s1043_s27  ;;  %s862_s6 = smov [#allocation7]  }
 0x1c6   : > { %p786_p12 = scmp.ne.s32.totalorder %s1056_s4, %s785_s5  ;;  %s789_s7 = sshll.u32 %s862_s6, 4  ;;  %s790_s7 = int_to_ptr.vmem [resolvable:$false] %s789_s7 }
 0x1c7   : > { %s791_s13 = scalar_lea.vmem %s790_s7, 2048  ;;  %p792_p13 = scmp.lt.s32.totalorder %s1056_s4, %s790_s7 }
 0x1c8   : > { %p787_p6 = pnand %p786_p12, %p562_p4  ;;  %p793_p3 = scmp.lt.s32.totalorder %s791_s13, %s785_s5 }
 0x1ca   : > { %p788_p8 = pneg %p787_p6  ;;  %p794_p7 = por %p793_p3, %p792_p13 }
 0x1cc   : > { %p795_p9 = pnand %p794_p7, %p788_p8 }
 0x1ce   : > { %798 = shalt.err (!%p795_p9)
}
 0x1cf   : > { %s799_s18 = scalar_lea.hbm %s1053_s3, %s1043_s27  ;;  %s803_s19 = scalar_lea.hbm %s1103_s2, 2432 }
 0x1d0   : > { %p800_p11 = scmp.ne.s32.totalorder %s1053_s3, %s799_s18  ;;  %p804_p2 = scmp.lt.u32.totalorder %s1053_s3, %s1103_s2 }
 0x1d1   : > { %p805_p10 = scmp.lt.u32.totalorder %s803_s19, %s799_s18  ;;  %p807_p12 = scmp.lt.u32.totalorder %s799_s18, %s1053_s3 }
 0x1d2   : > { %p801_p5 = pnand %p800_p11, %p562_p4 }
 0x1d3   : > { %p806_p1 = por %p805_p10, %p804_p2 }
 0x1d4   : > { %p802_p0 = pneg %p801_p5 }
 0x1d5   : > { %p808_p6 = por %p807_p12, %p806_p1 }
 0x1d7   : > { %p809_p8 = pnand %p808_p6, %p802_p0 }
 0x1d9   : > { %812 = shalt.err (!%p809_p8)
}
 0x1da   : > { %s863_s22 = smov 64   ;;  %s864_s23 = smov 4  }
 0x1db   : > { %450 = dma.vmem_to_hbm [thread:$0]  (%p562_p4), %s1056_s4, %s1043_s27, %s1053_s3, %s425_s26, %s863_s22, %s863_s22, %s864_s23  }
 0x1dc PF: > { %p686_p13 = scmp.ge.s32.totalorder %s855_s12, 2  ;;  %s459_s28 = sand.u32 1, %s843_s9  }
 0x1dd   : > { %p1118_p3 = scmp.ne.s32.totalorder %s1108_s16, 0  ;;  %s460_s14 = scalar_lea.sflag [#allocation4], %s459_s28 }
 0x1df   : > { %p680_p7 = pnand %p686_p13, %p1118_p3 }
 0x1e1   : > { %838 = dma.done.wait (!%p680_p7), %s460_s14, 1024  }
 0x1e2   : > { %840 = vsyncadd (!%p680_p7), %s460_s14, 4294966272  ;;  %p16_p9 = scmp.ge.s32.totalorder %s933_s21, 5   ;;  %s1119_s9 = smov %s847_s10 }
 0x1e3   : > { %s1120_s10 = smov %s851_s11  ;;  %s1121_s11 = smov %s959_s8 }
 0x1e4   : > { %s1122_s12 = smov %s933_s21  ;;  %18 = sbr.rel (!%p16_p9) target bundleno = 6 (0x6), region = 77 }
 0x1eb   :  { %465 = vsyncpa [#allocation3], 1 }
 0x1ec   :  { %467 = vsyncpa [#allocation3 + $0x1], 1 }
 0x1ed   :  { %468 = vsyncpa [#allocation6], 1 }
 0x1ee   :  { %469 = vsyncpa [#allocation4], 1 }
 0x1ef   :  { %471 = vsyncpa [#allocation4 + $0x1], 1 }

</bundles_post_ra>
